<compile_context>
chip_gen: v6e
topology: v6e:2x2x1
jax: 0.10.0
libtpu: 0.0.40
codegen_flags: <defaults>
</compile_context>

<pallas_src>
import functools

import jax
import jax.numpy as jnp
from jax.experimental import pallas as pl
from jax.experimental.pallas import tpu as pltpu

BN_EPS = 1e-5
LANE = 128
# Scoped-VMEM request for both calls.  48 MiB leaves headroom under v7x's
# 64 MiB physical VMEM and is far below v5e/v6e's 128 MiB, while being well
# above the scoped defaults (16 MiB v5e / 32 MiB v6e,v7x) that would
# otherwise cap the batch tile.
VMEM_BUDGET = 48 * 1024 * 1024


def _round_up(a: int, b: int) -> int:
    return (a + b - 1) // b * b


def _resident_spec(block_shape):
    """Constant-index block (VMEM-resident across all batch tiles).

    Single-buffered: the block never changes, so the default double buffer
    only wastes VMEM (biggest effect on w_fc_t under v7x's 64 MiB VMEM).
    Falls back to the default pipeline mode on older JAX versions.
    """
    index_map = lambda i: (0,) * len(block_shape)
    try:
        return pl.BlockSpec(block_shape, index_map,
                            pipeline_mode=pl.Buffered(1))
    except TypeError:  # pipeline_mode / Buffered not supported
        return pl.BlockSpec(block_shape, index_map)


# ---------------------------------------------------------------------------
# Pass 1: embed -> L2-normalize -> relu -> per-tile BN partial statistics
# ---------------------------------------------------------------------------
def _make_stats_kernel(batch: int, tile_rows: int, padded_batch: int):
    masked = padded_batch > batch  # zero-padded batch rows must not pollute stats

    def kernel(x_ref, wb_ref, bb_ref, normed_ref, psum_ref, psq_ref):
        # bf16 cast happens in-kernel (VPU work hidden under the MXU push);
        # the wrapper feeds raw f32 x, so there is no separate XLA cast pass.
        emb = jnp.dot(x_ref[...].astype(jnp.bfloat16), wb_ref[...],
                      preferred_element_type=jnp.float32) + bb_ref[...]

        # L2 normalize (rsqrt hits the otherwise-idle EUP; multiply, not divide).
        inv_norm = jax.lax.rsqrt(jnp.sum(emb * emb, axis=-1, keepdims=True))
        normed = emb * inv_norm
        normed_ref[...] = normed

        r = jnp.maximum(normed, 0.0)

        def write_stats(rv):
            # Per-tile partials -> (1, 1, Cp) blocks of the (n_tiles, 1, Cp)
            # outputs; no cross-step accumulation, so the grid stays "parallel".
            psum_ref[...] = jnp.sum(rv, axis=0, keepdims=True)[None]
            psq_ref[...] = jnp.sum(rv * rv, axis=0, keepdims=True)[None]

        if masked:
            i = pl.program_id(0)
            last = pl.num_programs(0) - 1

            @pl.when(i == last)          # only the final tile has padded rows
            def _():
                row = i * tile_rows + jax.lax.broadcasted_iota(
                    jnp.int32, (tile_rows, 1), 0)
                write_stats(jnp.where(row < batch, r, 0.0))

            @pl.when(i != last)          # full tiles skip the mask entirely
            def _():
                write_stats(r)
        else:
            write_stats(r)

    return kernel


# ---------------------------------------------------------------------------
# Pass 2: BN apply (precomputed scale/shift) + fc Linear(C -> C)
# ---------------------------------------------------------------------------
def _apply_kernel(normed_ref, scale_ref, shift_ref, wfc_ref, bfc_ref,
                  logits_ref):
    feat = jnp.maximum(normed_ref[...], 0.0) * scale_ref[...] + shift_ref[...]
    logits_ref[...] = jnp.dot(feat.astype(jnp.bfloat16), wfc_ref[...],
                              preferred_element_type=jnp.float32) + bfc_ref[...]


# ---------------------------------------------------------------------------
# One-time parameter prep: transpose, bf16-cast MXU weights, pad class axis
# to a lane-dense multiple of 128 (zero padding keeps norms/BN/logits exact).
# ---------------------------------------------------------------------------
def prepare_params(w_base, b_base, bn_gamma, bn_beta, w_fc, b_fc):
    num_classes = w_base.shape[0]
    cp = _round_up(num_classes, LANE)
    pad_c = cp - num_classes

    def pad_vec(v):
        return jnp.pad(v.astype(jnp.float32), (0, pad_c)).reshape(1, cp)

    return {
        "w_base_t": jnp.pad(w_base.T.astype(jnp.bfloat16), ((0, 0), (0, pad_c))),
        "b_base": pad_vec(b_base),
        "gamma": pad_vec(bn_gamma),   # pad value 0 -> padded feat columns are 0
        "beta": pad_vec(bn_beta),
        "w_fc_t": jnp.pad(w_fc.T.astype(jnp.bfloat16), ((0, pad_c), (0, pad_c))),
        "b_fc": pad_vec(b_fc),
    }


@functools.partial(jax.jit, static_argnames=("num_classes", "block_rows"))
def cosine_xent_forward(x, params, *, num_classes, block_rows=1024):
    batch, d_in = x.shape
    cp = params["w_base_t"].shape[1]

    # --- batch tile: as large as the VMEM budget allows (both passes are
    # HBM-bound; measured mem-bound tiled kernels go from ~63% of roofline at
    # 256-row tiles to ~85% at 512-1024).  Multiple of 16 (bf16 sublane pack).
    tb = min(_round_up(block_rows, 16), _round_up(batch, 16))

    def live_bytes(t):
        p1 = (2 * t * d_in * 4        # x tile (f32, double-buffered)
              + d_in * cp * 2         # w_base_t (bf16, single-buffered)
              + 2 * t * cp * 4        # normed out tile (double-buffered)
              + 8 * cp * 4)           # bias + per-tile stat blocks
        p2 = (2 * t * cp * 4          # normed in tile
              + cp * cp * 2           # w_fc_t (bf16, single-buffered)
              + 2 * t * cp * 4        # logits out tile
              + 10 * cp * 4)          # scale / shift / bias
        return max(p1, p2)

    while tb > 16 and live_bytes(tb) > VMEM_BUDGET * 7 // 8:
        tb = max(16, _round_up(tb // 2, 16))

    n_tiles = pl.cdiv(batch, tb)
    bp = n_tiles * tb

    # Only the (rare) batch remainder is padded; x keeps its f32 dtype so no
    # extra cast pass over the full input.
    x_p = x if bp == batch else jnp.pad(x, ((0, bp - batch), (0, 0)))

    cparams = pltpu.CompilerParams(dimension_semantics=("parallel",),
                                   vmem_limit_bytes=VMEM_BUDGET)

    # ---- pass 1: normalize + per-tile BN partial stats (fully parallel) ----
    cost1 = pl.CostEstimate(
        flops=2 * bp * d_in * cp + 8 * bp * cp,
        transcendentals=bp,
        bytes_accessed=4 * bp * d_in + 2 * d_in * cp + 4 * cp
        + 4 * bp * cp + 8 * n_tiles * cp,
    )
    normed_p, psum, psq = pl.pallas_call(
        _make_stats_kernel(batch, tb, bp),
        grid=(n_tiles,),
        in_specs=[
            pl.BlockSpec((tb, d_in), lambda i: (i, 0)),
            _resident_spec((d_in, cp)),     # weight stays VMEM-resident
            _resident_spec((1, cp)),
        ],
        out_specs=(
            pl.BlockSpec((tb, cp), lambda i: (i, 0)),
            pl.BlockSpec((1, 1, cp), lambda i: (i, 0, 0)),   # per-tile sum
            pl.BlockSpec((1, 1, cp), lambda i: (i, 0, 0)),   # per-tile sumsq
        ),
        out_shape=(
            jax.ShapeDtypeStruct((bp, cp), jnp.float32),
            jax.ShapeDtypeStruct((n_tiles, 1, cp), jnp.float32),
            jax.ShapeDtypeStruct((n_tiles, 1, cp), jnp.float32),
        ),
        compiler_params=cparams,
        cost_estimate=cost1,
    )(x_p, params["w_base_t"], params["b_base"])

    # ---- tiny (n_tiles, Cp) partial reduction + BN scale/shift fold, done
    # once here (on (1, Cp) vectors) instead of per batch tile inside pass 2.
    inv_b = 1.0 / float(batch)
    col_sum = jnp.sum(psum, axis=(0, 1))[None, :]
    col_sq = jnp.sum(psq, axis=(0, 1))[None, :]
    mean = col_sum * inv_b
    # One-pass E[x^2]-E[x]^2 variance; relu(normed) is in [0,1] so f32 is fine.
    var = jnp.maximum(col_sq * inv_b - mean * mean, 0.0)
    rstd = jax.lax.rsqrt(var + BN_EPS)
    scale = rstd * params["gamma"]
    shift = params["beta"] - mean * scale

    # ---- pass 2: BN apply + fc (row-parallel -> megacore "parallel") ----
    cost2 = pl.CostEstimate(
        flops=2 * bp * cp * cp + 3 * bp * cp,
        transcendentals=0,
        bytes_accessed=4 * bp * cp + 2 * cp * cp + 16 * cp + 4 * bp * cp,
    )
    logits_p = pl.pallas_call(
        _apply_kernel,
        grid=(n_tiles,),
        in_specs=[
            pl.BlockSpec((tb, cp), lambda i: (i, 0)),
            _resident_spec((1, cp)),
            _resident_spec((1, cp)),
            _resident_spec((cp, cp)),       # fc weight stays VMEM-resident
            _resident_spec((1, cp)),
        ],
        out_specs=pl.BlockSpec((tb, cp), lambda i: (i, 0)),
        out_shape=jax.ShapeDtypeStruct((bp, cp), jnp.float32),
        compiler_params=cparams,
        cost_estimate=cost2,
    )(normed_p, scale, shift, params["w_fc_t"], params["b_fc"])

    return logits_p[:batch, :num_classes], normed_p[:batch, :num_classes]


# ---------------------------------------------------------------------------
# Pure-JAX reference (same numeric recipe: bf16 MXU operands, f32 elsewhere)
# ---------------------------------------------------------------------------
def _reference(x, w_base, b_base, gamma, beta, w_fc, b_fc):
    emb = jnp.dot(x.astype(jnp.bfloat16), w_base.T.astype(jnp.bfloat16),
                  preferred_element_type=jnp.float32) + b_base[None, :]
    normed = emb / jnp.linalg.norm(emb, axis=-1, keepdims=True)
    r = jnp.maximum(normed, 0.0)
    mean = jnp.mean(r, axis=0, keepdims=True)
    var = jnp.mean((r - mean) ** 2, axis=0, keepdims=True)
    feat = (r - mean) / jnp.sqrt(var + BN_EPS) * gamma[None, :] + beta[None, :]
    logits = jnp.dot(feat.astype(jnp.bfloat16), w_fc.T.astype(jnp.bfloat16),
                     preferred_element_type=jnp.float32) + b_fc[None, :]
    return logits, normed


if __name__ == "__main__":
    # Small shapes; batch is NOT a multiple of the tile so the multi-tile grid,
    # the per-tile partial-stats path, and the last-tile masking all run.
    B, D, C = 40, 32, 16

    key = jax.random.PRNGKey(0)
    kx, kwb, kbb, kwf, kbf = jax.random.split(key, 5)

    x = jax.random.normal(kx, (B, D), dtype=jnp.float32)
    w_base = jax.random.normal(kwb, (C, D), dtype=jnp.float32) / jnp.sqrt(D)
    b_base = jax.random.normal(kbb, (C,), dtype=jnp.float32) * 0.1
    bn_gamma = jnp.ones((C,), dtype=jnp.float32)    # nn.BatchNorm1d defaults
    bn_beta = jnp.zeros((C,), dtype=jnp.float32)
    w_fc = jax.random.normal(kwf, (C, C), dtype=jnp.float32) / jnp.sqrt(C)
    b_fc = jax.random.normal(kbf, (C,), dtype=jnp.float32) * 0.1

    params = prepare_params(w_base, b_base, bn_gamma, bn_beta, w_fc, b_fc)
    logits, normed = cosine_xent_forward(x, params, num_classes=C,
                                         block_rows=16)
    jax.block_until_ready((logits, normed))

    ref_logits, ref_normed = _reference(x, w_base, b_base, bn_gamma, bn_beta,
                                        w_fc, b_fc)
    assert logits.shape == (B, C) and normed.shape == (B, C)
    assert jnp.allclose(normed, ref_normed, atol=1e-4, rtol=1e-4), (
        float(jnp.max(jnp.abs(normed - ref_normed))))
    # logits tolerance accounts for the bf16 re-quantization of `feat` before
    # the second MXU matmul (operand rounding can differ by 1 bf16 ulp).
    assert jnp.allclose(logits, ref_logits, atol=2e-2, rtol=2e-2), (
        float(jnp.max(jnp.abs(logits - ref_logits))))

    print("KERNEL_OK")
</pallas_src>

<mosaic_0001>
module attributes {stable_mosaic.version = 11 : i64} {
  func.func @kernel(%arg0: i32, %arg1: memref<16x32xf32, #tpu.memory_space<vmem>>, %arg2: memref<32x128xbf16, #tpu.memory_space<vmem>>, %arg3: memref<1x128xf32, #tpu.memory_space<vmem>>, %arg4: memref<16x128xf32, #tpu.memory_space<vmem>>, %arg5: memref<1x1x128xf32, #tpu.memory_space<vmem>>, %arg6: memref<1x1x128xf32, #tpu.memory_space<vmem>>) attributes {dimension_semantics = [#tpu.dimension_semantics<parallel>], iteration_bounds = array<i64: 3>, scalar_prefetch = 0 : i64, scratch_operands = 0 : i64, tpu.core_type = #tpu.core_type<tc>, window_params = [{transform_indices = @transform_0, window_bounds = array<i64: 16, 32>}, {pipeline_mode = #tpu.pipeline_mode<synchronous>, transform_indices = @transform_1, window_bounds = array<i64: 32, 128>}, {pipeline_mode = #tpu.pipeline_mode<synchronous>, transform_indices = @transform_2, window_bounds = array<i64: 1, 128>}, {transform_indices = @transform_3, window_bounds = array<i64: 16, 128>}, {transform_indices = @transform_4, window_bounds = array<i64: 1, 1, 128>}, {transform_indices = @transform_5, window_bounds = array<i64: 1, 1, 128>}]} {
    %c0 = arith.constant 0 : index
    %c0_0 = arith.constant 0 : index
    %0 = vector.load %arg1[%c0, %c0_0] : memref<16x32xf32, #tpu.memory_space<vmem>>, vector<16x32xf32>
    %1 = arith.truncf %0 : vector<16x32xf32> to vector<16x32xbf16>
    %c0_1 = arith.constant 0 : index
    %c0_2 = arith.constant 0 : index
    %2 = vector.load %arg2[%c0_1, %c0_2] : memref<32x128xbf16, #tpu.memory_space<vmem>>, vector<32x128xbf16>
    %cst = arith.constant dense<0.000000e+00> : vector<16x128xf32>
    %3 = tpu.matmul %1, %2, %cst {dimension_numbers = #tpu.dot_dimension_numbers<[1], [0], [0], [1], [0, 0, 1, 1], [], []>} : vector<16x32xbf16>, vector<32x128xbf16>, vector<16x128xf32> -> vector<16x128xf32>
    %c0_3 = arith.constant 0 : index
    %c0_4 = arith.constant 0 : index
    %4 = vector.load %arg3[%c0_3, %c0_4] : memref<1x128xf32, #tpu.memory_space<vmem>>, vector<1x128xf32>
    %5 = vector.broadcast %4 : vector<1x128xf32> to vector<16x128xf32>
    %6 = arith.addf %3, %5 : vector<16x128xf32>
    %7 = arith.mulf %6, %6 : vector<16x128xf32>
    %cst_5 = arith.constant dense<0.000000e+00> : vector<16xf32>
    %8 = vector.multi_reduction <add>, %7, %cst_5 [1] : vector<16x128xf32> to vector<16xf32>
    %9 = vector.shape_cast %8 : vector<16xf32> to vector<16x1xf32>
    %10 = math.rsqrt %9 : vector<16x1xf32>
    %11 = vector.broadcast %10 : vector<16x1xf32> to vector<16x128xf32>
    %12 = arith.mulf %6, %11 : vector<16x128xf32>
    %c0_6 = arith.constant 0 : index
    %c0_7 = arith.constant 0 : index
    %13 = vector.load %arg4[%c0_6, %c0_7] : memref<16x128xf32, #tpu.memory_space<vmem>>, vector<16x128xf32>
    tpu.vector_store %arg4[%c0_6, %c0_7], %12 {strides = array<i32>} : memref<16x128xf32, #tpu.memory_space<vmem>>, vector<16x128xf32>,
    %cst_8 = arith.constant 0.000000e+00 : f32
    %14 = vector.broadcast %cst_8 : f32 to vector<16x128xf32>
    %15 = arith.maximumf %12, %14 : vector<16x128xf32>
    %c2_i32 = arith.constant 2 : i32
    %16 = arith.cmpi eq, %arg0, %c2_i32 : i32
    %17 = arith.extui %16 : i1 to i32
    %c0_i32 = arith.constant 0 : i32
    %18 = arith.cmpi ne, %17, %c0_i32 : i32
    scf.if %18 {
      %c16_i32 = arith.constant 16 : i32
      %22 = arith.muli %arg0, %c16_i32 : i32
      %23 = tpu.iota {dimensions = array<i32: 0>} : vector<16x1xi32>
      %24 = vector.broadcast %22 : i32 to vector<16x1xi32>
      %25 = arith.addi %24, %23 : vector<16x1xi32>
      %c40_i32 = arith.constant 40 : i32
      %26 = vector.broadcast %c40_i32 : i32 to vector<16x1xi32>
      %27 = arith.cmpi slt, %25, %26 : vector<16x1xi32>
      %cst_11 = arith.constant 0.000000e+00 : f32
      %28 = vector.shape_cast %27 : vector<16x1xi1> to vector<16x1xi1>
      %29 = vector.broadcast %28 : vector<16x1xi1> to vector<16x128xi1>
      %30 = vector.broadcast %cst_11 : f32 to vector<16x128xf32>
      %31 = arith.select %29, %15, %30 : vector<16x128xi1>, vector<16x128xf32>
      %cst_12 = arith.constant dense<0.000000e+00> : vector<128xf32>
      %32 = vector.multi_reduction <add>, %31, %cst_12 [0] : vector<16x128xf32> to vector<128xf32>
      %33 = vector.shape_cast %32 : vector<128xf32> to vector<1x128xf32>
      %34 = vector.shape_cast %33 : vector<1x128xf32> to vector<1x1x128xf32>
      %c0_13 = arith.constant 0 : index
      %c0_14 = arith.constant 0 : index
      %c0_15 = arith.constant 0 : index
      %35 = vector.load %arg5[%c0_13, %c0_14, %c0_15] : memref<1x1x128xf32, #tpu.memory_space<vmem>>, vector<1x1x128xf32>
      tpu.vector_store %arg5[%c0_13, %c0_14, %c0_15], %34 {strides = array<i32>} : memref<1x1x128xf32, #tpu.memory_space<vmem>>, vector<1x1x128xf32>,
      %36 = arith.mulf %31, %31 : vector<16x128xf32>
      %cst_16 = arith.constant dense<0.000000e+00> : vector<128xf32>
      %37 = vector.multi_reduction <add>, %36, %cst_16 [0] : vector<16x128xf32> to vector<128xf32>
      %38 = vector.shape_cast %37 : vector<128xf32> to vector<1x128xf32>
      %39 = vector.shape_cast %38 : vector<1x128xf32> to vector<1x1x128xf32>
      %c0_17 = arith.constant 0 : index
      %c0_18 = arith.constant 0 : index
      %c0_19 = arith.constant 0 : index
      %40 = vector.load %arg6[%c0_17, %c0_18, %c0_19] : memref<1x1x128xf32, #tpu.memory_space<vmem>>, vector<1x1x128xf32>
      tpu.vector_store %arg6[%c0_17, %c0_18, %c0_19], %39 {strides = array<i32>} : memref<1x1x128xf32, #tpu.memory_space<vmem>>, vector<1x1x128xf32>,
    } else {
    }
    %c2_i32_9 = arith.constant 2 : i32
    %19 = arith.cmpi ne, %arg0, %c2_i32_9 : i32
    %20 = arith.extui %19 : i1 to i32
    %c0_i32_10 = arith.constant 0 : i32
    %21 = arith.cmpi ne, %20, %c0_i32_10 : i32
    scf.if %21 {
      %cst_11 = arith.constant dense<0.000000e+00> : vector<128xf32>
      %22 = vector.multi_reduction <add>, %15, %cst_11 [0] : vector<16x128xf32> to vector<128xf32>
      %23 = vector.shape_cast %22 : vector<128xf32> to vector<1x128xf32>
      %24 = vector.shape_cast %23 : vector<1x128xf32> to vector<1x1x128xf32>
      %c0_12 = arith.constant 0 : index
      %c0_13 = arith.constant 0 : index
      %c0_14 = arith.constant 0 : index
      %25 = vector.load %arg5[%c0_12, %c0_13, %c0_14] : memref<1x1x128xf32, #tpu.memory_space<vmem>>, vector<1x1x128xf32>
      tpu.vector_store %arg5[%c0_12, %c0_13, %c0_14], %24 {strides = array<i32>} : memref<1x1x128xf32, #tpu.memory_space<vmem>>, vector<1x1x128xf32>,
      %26 = arith.mulf %15, %15 : vector<16x128xf32>
      %cst_15 = arith.constant dense<0.000000e+00> : vector<128xf32>
      %27 = vector.multi_reduction <add>, %26, %cst_15 [0] : vector<16x128xf32> to vector<128xf32>
      %28 = vector.shape_cast %27 : vector<128xf32> to vector<1x128xf32>
      %29 = vector.shape_cast %28 : vector<1x128xf32> to vector<1x1x128xf32>
      %c0_16 = arith.constant 0 : index
      %c0_17 = arith.constant 0 : index
      %c0_18 = arith.constant 0 : index
      %30 = vector.load %arg6[%c0_16, %c0_17, %c0_18] : memref<1x1x128xf32, #tpu.memory_space<vmem>>, vector<1x1x128xf32>
      tpu.vector_store %arg6[%c0_16, %c0_17, %c0_18], %29 {strides = array<i32>} : memref<1x1x128xf32, #tpu.memory_space<vmem>>, vector<1x1x128xf32>,
    } else {
    }
    return
  }
  func.func @transform_0(%arg0: i32) -> (i32, i32) {
    %c0_i32 = arith.constant 0 : i32
    %c0_i32_0 = arith.constant 0 : i32
    return %arg0, %c0_i32 : i32, i32
  }
  func.func @transform_1(%arg0: i32) -> (i32, i32) {
    %c0_i32 = arith.constant 0 : i32
    %c0_i32_0 = arith.constant 0 : i32
    %c0_i32_1 = arith.constant 0 : i32
    return %c0_i32, %c0_i32_0 : i32, i32
  }
  func.func @transform_2(%arg0: i32) -> (i32, i32) {
    %c0_i32 = arith.constant 0 : i32
    %c0_i32_0 = arith.constant 0 : i32
    %c0_i32_1 = arith.constant 0 : i32
    return %c0_i32, %c0_i32_0 : i32, i32
  }
  func.func @transform_3(%arg0: i32) -> (i32, i32) {
    %c0_i32 = arith.constant 0 : i32
    %c0_i32_0 = arith.constant 0 : i32
    return %arg0, %c0_i32 : i32, i32
  }
  func.func @transform_4(%arg0: i32) -> (i32, i32, i32) {
    %c0_i32 = arith.constant 0 : i32
    %c0_i32_0 = arith.constant 0 : i32
    %c0_i32_1 = arith.constant 0 : i32
    return %arg0, %c0_i32, %c0_i32_0 : i32, i32, i32
  }
  func.func @transform_5(%arg0: i32) -> (i32, i32, i32) {
    %c0_i32 = arith.constant 0 : i32
    %c0_i32_0 = arith.constant 0 : i32
    %c0_i32_1 = arith.constant 0 : i32
    return %arg0, %c0_i32, %c0_i32_0 : i32, i32, i32
  }
}

module attributes {stable_mosaic.version = 11 : i64} {
  func.func @_apply_kernel(%arg0: i32, %arg1: memref<16x128xf32, #tpu.memory_space<vmem>>, %arg2: memref<1x128xf32, #tpu.memory_space<vmem>>, %arg3: memref<1x128xf32, #tpu.memory_space<vmem>>, %arg4: memref<128x128xbf16, #tpu.memory_space<vmem>>, %arg5: memref<1x128xf32, #tpu.memory_space<vmem>>, %arg6: memref<16x128xf32, #tpu.memory_space<vmem>>) attributes {dimension_semantics = [#tpu.dimension_semantics<parallel>], iteration_bounds = array<i64: 3>, scalar_prefetch = 0 : i64, scratch_operands = 0 : i64, tpu.core_type = #tpu.core_type<tc>, window_params = [{transform_indices = @transform_0, window_bounds = array<i64: 16, 128>}, {pipeline_mode = #tpu.pipeline_mode<synchronous>, transform_indices = @transform_1, window_bounds = array<i64: 1, 128>}, {pipeline_mode = #tpu.pipeline_mode<synchronous>, transform_indices = @transform_2, window_bounds = array<i64: 1, 128>}, {pipeline_mode = #tpu.pipeline_mode<synchronous>, transform_indices = @transform_3, window_bounds = array<i64: 128, 128>}, {pipeline_mode = #tpu.pipeline_mode<synchronous>, transform_indices = @transform_4, window_bounds = array<i64: 1, 128>}, {transform_indices = @transform_5, window_bounds = array<i64: 16, 128>}]} {
    %c0 = arith.constant 0 : index
    %c0_0 = arith.constant 0 : index
    %0 = vector.load %arg1[%c0, %c0_0] : memref<16x128xf32, #tpu.memory_space<vmem>>, vector<16x128xf32>
    %cst = arith.constant 0.000000e+00 : f32
    %1 = vector.broadcast %cst : f32 to vector<16x128xf32>
    %2 = arith.maximumf %0, %1 : vector<16x128xf32>
    %c0_1 = arith.constant 0 : index
    %c0_2 = arith.constant 0 : index
    %3 = vector.load %arg2[%c0_1, %c0_2] : memref<1x128xf32, #tpu.memory_space<vmem>>, vector<1x128xf32>
    %4 = vector.broadcast %3 : vector<1x128xf32> to vector<16x128xf32>
    %5 = arith.mulf %2, %4 : vector<16x128xf32>
    %c0_3 = arith.constant 0 : index
    %c0_4 = arith.constant 0 : index
    %6 = vector.load %arg3[%c0_3, %c0_4] : memref<1x128xf32, #tpu.memory_space<vmem>>, vector<1x128xf32>
    %7 = vector.broadcast %6 : vector<1x128xf32> to vector<16x128xf32>
    %8 = arith.addf %5, %7 : vector<16x128xf32>
    %9 = arith.truncf %8 : vector<16x128xf32> to vector<16x128xbf16>
    %c0_5 = arith.constant 0 : index
    %c0_6 = arith.constant 0 : index
    %10 = vector.load %arg4[%c0_5, %c0_6] : memref<128x128xbf16, #tpu.memory_space<vmem>>, vector<128x128xbf16>
    %cst_7 = arith.constant dense<0.000000e+00> : vector<16x128xf32>
    %11 = tpu.matmul %9, %10, %cst_7 {dimension_numbers = #tpu.dot_dimension_numbers<[1], [0], [0], [1], [0, 0, 1, 1], [], []>} : vector<16x128xbf16>, vector<128x128xbf16>, vector<16x128xf32> -> vector<16x128xf32>
    %c0_8 = arith.constant 0 : index
    %c0_9 = arith.constant 0 : index
    %12 = vector.load %arg5[%c0_8, %c0_9] : memref<1x128xf32, #tpu.memory_space<vmem>>, vector<1x128xf32>
    %13 = vector.broadcast %12 : vector<1x128xf32> to vector<16x128xf32>
    %14 = arith.addf %11, %13 : vector<16x128xf32>
    %c0_10 = arith.constant 0 : index
    %c0_11 = arith.constant 0 : index
    %15 = vector.load %arg6[%c0_10, %c0_11] : memref<16x128xf32, #tpu.memory_space<vmem>>, vector<16x128xf32>
    tpu.vector_store %arg6[%c0_10, %c0_11], %14 {strides = array<i32>} : memref<16x128xf32, #tpu.memory_space<vmem>>, vector<16x128xf32>,
    return
  }
  func.func @transform_0(%arg0: i32) -> (i32, i32) {
    %c0_i32 = arith.constant 0 : i32
    %c0_i32_0 = arith.constant 0 : i32
    return %arg0, %c0_i32 : i32, i32
  }
  func.func @transform_1(%arg0: i32) -> (i32, i32) {
    %c0_i32 = arith.constant 0 : i32
    %c0_i32_0 = arith.constant 0 : i32
    %c0_i32_1 = arith.constant 0 : i32
    return %c0_i32, %c0_i32_0 : i32, i32
  }
  func.func @transform_2(%arg0: i32) -> (i32, i32) {
    %c0_i32 = arith.constant 0 : i32
    %c0_i32_0 = arith.constant 0 : i32
    %c0_i32_1 = arith.constant 0 : i32
    return %c0_i32, %c0_i32_0 : i32, i32
  }
  func.func @transform_3(%arg0: i32) -> (i32, i32) {
    %c0_i32 = arith.constant 0 : i32
    %c0_i32_0 = arith.constant 0 : i32
    %c0_i32_1 = arith.constant 0 : i32
    return %c0_i32, %c0_i32_0 : i32, i32
  }
  func.func @transform_4(%arg0: i32) -> (i32, i32) {
    %c0_i32 = arith.constant 0 : i32
    %c0_i32_0 = arith.constant 0 : i32
    %c0_i32_1 = arith.constant 0 : i32
    return %c0_i32, %c0_i32_0 : i32, i32
  }
  func.func @transform_5(%arg0: i32) -> (i32, i32) {
    %c0_i32 = arith.constant 0 : i32
    %c0_i32_0 = arith.constant 0 : i32
    return %arg0, %c0_i32 : i32, i32
  }
}

</mosaic_0001>

<bundles_post_ra>
// kernel: cosine_xent_forward.2
= control target key start
LH: loop header
LB: loop body
LE: loop exit
PB: predicated region body
PF: predicated region fallthrough
CT: control target
= control target key end

     0   :  { %s581_s18 = smov 0   ;;  %s629_s0 = inlined_call_operand.vmem [shape: f32[48,32], index: 0, kind: input, shape index: {}]   ;;  %s630_s1 = inlined_call_operand.vmem [shape: bf16[32,128], index: 1, kind: input, shape index: {}]   ;;  %s631_s2 = inlined_call_operand.vmem [shape: f32[1,128], index: 2, kind: input, shape index: {}]   ;;  %s632_s3 = inlined_call_operand.vmem [shape: f32[48,128], index: 3, kind: output, shape index: {0}]   ;;  %s633_s4 = inlined_call_operand.vmem [shape: f32[3,1,128], index: 4, kind: output, shape index: {1}]   ;;  %s634_s5 = inlined_call_operand.vmem [shape: f32[3,1,128], index: 5, kind: output, shape index: {2}]  }
   0x1 LB: > { %s587_s19 = sadd.s32 4294967295, %s547_s18   ;;  %p500_p0 = scmp.ge.s32.totalorder %s547_s18, 1  ;;  %s547_s18 = sphi %s581_s18, %s16_s18  }
   0x2   : > { %p193_p1 = scmp.lt.s32.totalorder %s547_s18, 4 }
   0x4   : > { %p194_p2 = pnand %p500_p0, %p193_p1 }
   0x5   : > { %p239_p3 = scmp.lt.s32.totalorder (!%p194_p2), %s587_s19, 2  ;;  %s501_s25 = sshll.u32 (!%p194_p2), %s587_s19, 1 }
   0x6   : > { %197 = sbr.rel (%p194_p2) target bundleno = 427 (0x1ab), region = 32  ;;  %p228_p4 = scmp.lt.s32.totalorder (!%p194_p2), %s501_s25, 5 }
   0x7   : > { %p509_p5 = scmp.ne.s32.totalorder (!%p194_p2), %s587_s19, 2 }
   0xb   : > { %v549_v0 = vmov 0.0   ;;  %v535_v1 = vld [vmem:[%s630_s1 + $0x8] sm:$0xff]   ;;  %s240_s22 = scalar_select %p239_p3, %s587_s19, 2  ;;  %vm550_vm0 = vmmov 0   ;;  %v536_v2 = vld [vmem:[%s630_s1] sm:$0xff]   ;;  %vm272_vm1 = vcmask 261120  }
   0xc   : > { %517 = vmatprep.subr.bf16.mxu0 %v549_v0  ;;  %521 = vmatprep.mubr.msk.bf16.mxu0 %vm550_vm0, %v549_v0  ;;  %s636_s25 = smov (!%p228_p4, %s501_s25), 5  ;;  %v505_v6 = vld [vmem:[%s631_s2] ss:$0 sm:$0xff]  ;;  %s510_s16 = sshll.u32 (!%p509_p5), %s587_s19, 4 }
   0xd   : > { %518 = vmatpush3.bf16.msra.mxu0 %v535_v1  ;;  %s603_s28 = scalar_lea.vmem %s633_s4, %s240_s22  ;;  %s608_s6 = scalar_lea.vmem %s634_s5, %s240_s22 }
   0xe   : > { %519 = vmatprep.subr.bf16.mxu0 %v549_v0  ;;  %s502_s7 = sshll.u32 %s636_s25, 3 }
   0xf   : > { %s231_s10 = scalar_lea.vmem %s629_s0, %s502_s7  ;;  %s237_s15 = scalar_lea.vmem %s632_s3, %s502_s7 }
  0x10   : > { %v246_v3 = vld [vmem:[%s231_s10] sm:$0xff]  ;;  %v247_v4 = vld [vmem:[%s231_s10 + $0x8] sm:$0xff] }
  0x11   : > { %520 = vmatpush3.bf16.msra.mxu0 %v536_v2  ;;  %v248_v5 = vpack.c.bf16 %v247_v4, %v246_v3 }
  0x14   : > { %522 = vmatmul.mubr.msk.bf16.vlgmr.msra.gmra.mxu0 %vm272_vm1, %v248_v5 }
  0xd4   : > { %v310_v7 = vpop.f32.mrf.mxu0 }
  0xd5   : > { %v311_v8 = vadd.f32 %v505_v6, %v310_v7 }
  0xd6   : > { %v523_v9 = vpop.f32.mrf.mxu0 }
  0xd7   : > { %v317_v10 = vmul.f32 %v311_v8, %v311_v8 }
  0xd8   : > { %v313_v11 = vpop.f32.mrf.mxu0 }
  0xd9   : > { %v314_v12 = vadd.f32 %v505_v6, %v313_v11  ;;  %319 = vadd.xlane.f32.xlu0 %v317_v10 }
  0xda   : > { %v524_v13 = vpop.f32.mrf.mxu0 }
  0xdb   : > { %v318_v14 = vmul.f32 %v314_v12, %v314_v12 }
  0xdd   : > { %321 = vadd.xlane.f32.xlu0 %v318_v14 }
 0x162   : > { %v320_v15 = vpop.xlane.xlu0 %319 }
 0x163   : > { %537 = vrsqrt.f32 %v320_v15 }
 0x166   : > { %v322_v16 = vpop.xlane.xlu0 %321 }
 0x167   : > { %539 = vrsqrt.f32 %v322_v16 }
 0x170   : > { %v538_v17 = vpop.eup %537 }
 0x171   : > { %v325_v18 = vmul.f32 %v538_v17, %v311_v8 }
 0x173   : > { %327 = vst [vmem:[%s237_s15] sm:$0xff] %v325_v18  ;;  %v329_v19 = vmax.f32 %v325_v18, 0.0  ;;  %334 = sbr.rel (%p509_p5) target bundleno = 403 (0x193), region = 36 }
 0x174   : > { %v540_v20 = vpop.eup %539 }
 0x175   : > { %v326_v21 = vmul.f32 %v540_v20, %v314_v12 }
 0x177   : > { %328 = vst [vmem:[%s237_s15 + $0x8] sm:$0xff] %v326_v21  ;;  %v330_v22 = vmax.f32 %v326_v21, 0.0 }
 0x178   : > { %v336_v23 = vlaneseq  ;;  %v339_v24 = vstv %s510_s16 }
 0x17a   : > { %v337_v25 = vshrl.u32 %v336_v23, 7 }
 0x17c   : > { %v338_v26 = vadd.s32 8, %v337_v25  ;;  %v340_v27 = vadd.s32 %v339_v24, %v337_v25 }
 0x17e   : > { %v341_v28 = vadd.s32 %v339_v24, %v338_v26  ;;  %vm342_vm2 = vcmp.lt.s32.totalorder %v340_v27, 40 }
 0x17f   : > { %v348_v29 = vsel %vm342_vm2, %v329_v19, 0.0 }
 0x180   : > { %vm343_vm3 = vcmp.lt.s32.totalorder %v341_v28, 40  ;;  %v358_v30 = vmul.f32 %v348_v29, %v348_v29 }
 0x181   : > { %v349_v31 = vsel %vm343_vm3, %v330_v22, 0.0 }
 0x182   : > { %v350_v32 = vadd.f32 %v349_v31, %v348_v29  ;;  %v359_v33 = vmul.f32 %v349_v31, %v349_v31 }
 0x184   : > { %v351_v34 = vrot.slane %v350_v32, 4  ;;  %v360_v35 = vadd.f32 %v359_v33, %v358_v30 }
 0x186   : > { %v352_v36 = vadd.f32 %v351_v34, %v350_v32  ;;  %v361_v37 = vrot.slane %v360_v35, 4 }
 0x188   : > { %v353_v38 = vrot.slane %v352_v36, 2  ;;  %v362_v39 = vadd.f32 %v361_v37, %v360_v35 }
 0x18a   : > { %v354_v40 = vadd.f32 %v353_v38, %v352_v36  ;;  %v363_v41 = vrot.slane %v362_v39, 2 }
 0x18c   : > { %v355_v42 = vrot.slane %v354_v40, 1  ;;  %v364_v43 = vadd.f32 %v363_v41, %v362_v39 }
 0x18e   : > { %v356_v44 = vadd.f32 %v355_v42, %v354_v40  ;;  %v365_v45 = vrot.slane %v364_v43, 1 }
 0x190   : > { %357 = vst [vmem:[%s603_s28] sm:$0x1] %v356_v44  ;;  %v366_v46 = vadd.f32 %v365_v45, %v364_v43 }
 0x192   : > { %367 = vst [vmem:[%s608_s6] sm:$0x1] %v366_v46 }
 0x193 PF: > { %p511_p6 = scmp.eq.s32.totalorder %s587_s19, 2 }
 0x195   : > { %371 = sbr.rel (%p511_p6) target bundleno = 427 (0x1ab), region = 40 }
 0x19a   : > { %v372_v47 = vadd.f32 %v330_v22, %v329_v19  ;;  %v380_v48 = vmul.f32 %v329_v19, %v329_v19  ;;  %v381_v49 = vmul.f32 %v330_v22, %v330_v22 }
 0x19c   : > { %v373_v50 = vrot.slane %v372_v47, 4  ;;  %v382_v51 = vadd.f32 %v381_v49, %v380_v48 }
 0x19e   : > { %v374_v52 = vadd.f32 %v373_v50, %v372_v47  ;;  %v383_v53 = vrot.slane %v382_v51, 4 }
 0x1a0   : > { %v375_v54 = vrot.slane %v374_v52, 2  ;;  %v384_v55 = vadd.f32 %v383_v53, %v382_v51 }
 0x1a2   : > { %v376_v56 = vadd.f32 %v375_v54, %v374_v52  ;;  %v385_v57 = vrot.slane %v384_v55, 2 }
 0x1a4   : > { %v377_v58 = vrot.slane %v376_v56, 1  ;;  %v386_v59 = vadd.f32 %v385_v57, %v384_v55 }
 0x1a6   : > { %v378_v60 = vadd.f32 %v377_v58, %v376_v56  ;;  %v387_v61 = vrot.slane %v386_v59, 1 }
 0x1a8   : > { %379 = vst [vmem:[%s603_s28] sm:$0x1] %v378_v60  ;;  %v388_v62 = vadd.f32 %v387_v61, %v386_v59 }
 0x1aa   : > { %389 = vst [vmem:[%s608_s6] sm:$0x1] %v388_v62 }
 0x1ab PF: > { %s16_s18 = sadd.s32 1, %s547_s18  }
 0x1ac   : > { %p13_p7 = scmp.ge.s32.totalorder %s16_s18, 5  }
 0x1ae   :  { %15 = sbr.rel (!%p13_p7) target bundleno = 1 (0x1), region = 94 }

// kernel: cosine_xent_forward.3
= control target key start
LH: loop header
LB: loop body
LE: loop exit
PB: predicated region body
PF: predicated region fallthrough
CT: control target
= control target key end

     0   :  { %s531_s18 = smov 0   ;;  %s588_s0 = inlined_call_operand.vmem [shape: f32[48,128], index: 0, kind: input, shape index: {}]   ;;  %s589_s1 = inlined_call_operand.vmem [shape: f32[1,128], index: 1, kind: input, shape index: {}]   ;;  %s590_s2 = inlined_call_operand.vmem [shape: f32[1,128], index: 2, kind: input, shape index: {}]   ;;  %s591_s3 = inlined_call_operand.vmem [shape: bf16[128,128], index: 3, kind: input, shape index: {}]   ;;  %s592_s4 = inlined_call_operand.vmem [shape: f32[1,128], index: 4, kind: input, shape index: {}]   ;;  %s593_s5 = inlined_call_operand.vmem [shape: f32[48,128], index: 5, kind: output, shape index: {}]  }
   0x1 LB: > { %s422_s19 = sadd.s32 4294967295, %s497_s18   ;;  %p426_p0 = scmp.ge.s32.totalorder %s497_s18, 1  ;;  %s497_s18 = sphi %s531_s18, %s15_s18  }
   0x2   : > { %p188_p1 = scmp.lt.s32.totalorder %s497_s18, 4 }
   0x4   : > { %p189_p2 = pnand %p426_p0, %p188_p1 }
   0x5   : > { %s427_s24 = sshll.u32 (!%p189_p2), %s422_s19, 1 }
   0x6   : > { %192 = sbr.rel (%p189_p2) target bundleno = 244 (0xf4), region = 40  ;;  %p217_p3 = scmp.lt.s32.totalorder (!%p189_p2), %s427_s24, 5 }
   0xb   : > { %v483_v0 = vld [vmem:[%s591_s3 + $0x38] sm:$0xff]   ;;  %v499_v1 = vmov 0.0   ;;  %v484_v2 = vld [vmem:[%s591_s3 + $0x30] sm:$0xff]   ;;  %vm500_vm0 = vmmov 0   ;;  %s595_s24 = smov (!%p217_p3, %s427_s24), 5  ;;  %v485_v3 = vld [vmem:[%s591_s3 + $0x28] sm:$0xff]  }
   0xc   : > { %453 = vmatprep.subr.bf16.mxu0 %v499_v1  ;;  %469 = vmatprep.mubr.msk.bf16.mxu0 %vm500_vm0, %v499_v1  ;;  %s428_s27 = sshll.u32 %s595_s24, 3  ;;  %v486_v4 = vld [vmem:[%s591_s3 + $0x20] sm:$0xff]   ;;  %v487_v5 = vld [vmem:[%s591_s3 + $0x18] sm:$0xff]   ;;  %v488_v10 = vld [vmem:[%s591_s3 + $0x10] sm:$0xff]  }
   0xd   : > { %454 = vmatpush3.bf16.msra.mxu0 %v483_v0  ;;  %s220_s7 = scalar_lea.vmem %s588_s0, %s428_s27  ;;  %v431_v11 = vld [vmem:[%s589_s1] ss:$0 sm:$0xff]  ;;  %v489_v14 = vld [vmem:[%s591_s3 + $0x8] sm:$0xff]   ;;  %s226_s26 = scalar_lea.vmem %s593_s5, %s428_s27 }
   0xe   : > { %455 = vmatprep.subr.bf16.mxu0 %v499_v1  ;;  %v229_v6 = vld [vmem:[%s220_s7] sm:$0xff]  ;;  %v230_v7 = vld [vmem:[%s220_s7 + $0x8] sm:$0xff] }
   0xf   : > { %v231_v8 = vmax.f32 %v229_v6, 0.0  ;;  %v232_v9 = vmax.f32 %v230_v7, 0.0  ;;  %v432_v15 = vld [vmem:[%s590_s2] ss:$0 sm:$0xff] }
  0x10   : > { %v490_v18 = vld [vmem:[%s591_s3] sm:$0xff]  }
  0x11   : > { %456 = vmatpush3.bf16.msra.mxu0 %v484_v2  ;;  %v240_v12 = vmul.f32 %v431_v11, %v231_v8  ;;  %v241_v13 = vmul.f32 %v431_v11, %v232_v9  ;;  %v433_v20 = vld [vmem:[%s592_s4] ss:$0 sm:$0xff] }
  0x12   : > { %457 = vmatprep.subr.bf16.mxu0 %v499_v1 }
  0x13   : > { %v249_v16 = vadd.f32 %v432_v15, %v240_v12  ;;  %v250_v17 = vadd.f32 %v432_v15, %v241_v13 }
  0x15   : > { %458 = vmatpush3.bf16.msra.mxu0 %v485_v3  ;;  %v251_v19 = vpack.c.bf16 %v250_v17, %v249_v16 }
  0x16   : > { %459 = vmatprep.subr.bf16.mxu0 %v499_v1 }
  0x19   : > { %460 = vmatpush3.bf16.msra.mxu0 %v486_v4 }
  0x1a   : > { %461 = vmatprep.subr.bf16.mxu0 %v499_v1 }
  0x1d   : > { %462 = vmatpush3.bf16.msra.mxu0 %v487_v5 }
  0x1e   : > { %463 = vmatprep.subr.bf16.mxu0 %v499_v1 }
  0x21   : > { %464 = vmatpush3.bf16.msra.mxu0 %v488_v10 }
  0x22   : > { %465 = vmatprep.subr.bf16.mxu0 %v499_v1 }
  0x25   : > { %466 = vmatpush3.bf16.msra.mxu0 %v489_v14 }
  0x26   : > { %467 = vmatprep.subr.bf16.mxu0 %v499_v1 }
  0x29   : > { %468 = vmatpush3.bf16.msra.mxu0 %v490_v18 }
  0x2c   : > { %470 = vmatmul.mubr.bf16.vlgmr.msra.gmra.mxu0 %v251_v19 }
  0xec   : > { %v357_v21 = vpop.f32.mrf.mxu0 }
  0xed   : > { %v358_v22 = vadd.f32 %v433_v20, %v357_v21 }
  0xee   : > { %v471_v23 = vpop.f32.mrf.mxu0 }
  0xef   : > { %364 = vst [vmem:[%s226_s26] sm:$0xff] %v358_v22 }
  0xf0   : > { %v360_v24 = vpop.f32.mrf.mxu0 }
  0xf1   : > { %v361_v25 = vadd.f32 %v433_v20, %v360_v24 }
  0xf2   : > { %v472_v26 = vpop.f32.mrf.mxu0 }
  0xf3   : > { %365 = vst [vmem:[%s226_s26 + $0x8] sm:$0xff] %v361_v25 }
  0xf4 PF: > { %s15_s18 = sadd.s32 1, %s497_s18  }
  0xf5   : > { %p12_p4 = scmp.ge.s32.totalorder %s15_s18, 5  }
  0xf7   :  { %14 = sbr.rel (!%p12_p4) target bundleno = 1 (0x1), region = 70 }

</bundles_post_ra>
